<compile_context>
chip_gen: v7x
topology: tpu7x:2x2x1
jax: 0.10.0
libtpu: 0.0.40
codegen_flags: <defaults>
</compile_context>

<pallas_src>
import functools

import numpy as np

import jax
import jax.numpy as jnp
from jax.experimental import pallas as pl
from jax.experimental.pallas import tpu as pltpu


def _calibrated_ce2d_kernel(pred_ref, tgt_ref, conf_ref, out_ref,
                            sum_acc, cnt_acc, *, bins, hw):
    b_id = pl.program_id(0)          # batch element
    p_id = pl.program_id(1)          # pixel block within the image

    first = jnp.logical_and(b_id == 0, p_id == 0)
    last = jnp.logical_and(b_id == pl.num_programs(0) - 1,
                           p_id == pl.num_programs(1) - 1)

    @pl.when(first)
    def _():
        sum_acc[...] = jnp.zeros_like(sum_acc)
        cnt_acc[...] = jnp.zeros_like(cnt_acc)

    x = pred_ref[0].astype(jnp.float32)       # (C, TP)   classes on sublanes
    t = tgt_ref[0]                            # (1, TP)   int32
    conf = conf_ref[0].astype(jnp.float32)    # (1, TP)

    c, tp = x.shape

    # log-softmax over the class (sublane) axis, then pick the target class via
    # an iota-compare (no dynamic gather on TPU).
    m = jnp.max(x, axis=0, keepdims=True)                                  # (1, TP)
    lse = m + jnp.log(jnp.sum(jnp.exp(x - m), axis=0, keepdims=True))      # (1, TP)
    cls = jax.lax.broadcasted_iota(jnp.int32, (c, tp), 0)
    x_t = jnp.sum(jnp.where(cls == t, x, 0.0), axis=0, keepdims=True)      # (1, TP)
    logp_t = x_t - lse                                                     # (1, TP)

    # ragged-tail mask: pixel index within this image vs. true H*W
    pix = p_id * tp + jax.lax.broadcasted_iota(jnp.int32, (1, tp), 1)
    in_image = pix < hw

    # calibration binning (only bins with coeff > 0 were baked in; bins are disjoint)
    wgt = jnp.zeros((1, tp), jnp.float32)
    inc = jnp.zeros((1, tp), jnp.float32)
    for lo, up, coeff in bins:
        in_bin = jnp.logical_and(conf > lo, conf <= up)
        wgt = wgt + jnp.where(in_bin, jnp.float32(coeff), 0.0)
        inc = inc + in_bin.astype(jnp.float32)

    # mask padded lanes (their logp_t may be garbage/NaN -> must use where, not *0)
    contrib = jnp.where(in_image, logp_t * wgt, 0.0)
    counted = jnp.where(in_image, inc, 0.0)

    sum_acc[...] += contrib
    cnt_acc[...] += counted

    @pl.when(last)
    def _():
        s = jnp.sum(sum_acc[...])
        n_sel = jnp.sum(cnt_acc[...])
        # guard the empty-selection case (PyTorch would divide by zero / crash)
        out_ref[...] = jnp.where(n_sel > 0.0, -s / n_sel, 0.0).reshape(1, 1)


def calibrated_ce2d(predict, target, confidence, accuracies, n_bin,
                    *, tile_pix=8192, ignore_label=255, size_average=True):
    """predict: (N,C,H,W), target: (N,H,W) int, confidence: (N*H*W,) f32,
    accuracies: host-side list of n_bin floats.  Returns scalar f32 loss."""
    del ignore_label, size_average   # stored by the module but unused in forward
    n, c, h, w = predict.shape
    hw = h * w
    assert target.shape == (n, h, w)
    assert confidence.shape == (n * h * w,)

    # Host-side calibration table: mirrors the Python loop / `if coeff > 0` branch.
    boundaries = np.linspace(0.0, 1.0, 15 + 1).astype(np.float32)
    lowers = boundaries[:n_bin]
    uppers = boundaries[1:n_bin + 1].copy()
    uppers[-1] = 1.0
    acc = np.asarray(accuracies, dtype=np.float32)
    coeffs = acc * 10.0 - (1.0 - acc) * 50.0
    bins = tuple((float(lo), float(up), float(cf))
                 for lo, up, cf in zip(lowers, uppers, coeffs) if cf > 0.0)
    if not bins:
        return jnp.zeros((), jnp.float32)

    # Free reshapes only (no transpose, no pad): pixels become the lane axis.
    pred = predict.reshape(n, c, hw)                        # keep input dtype (bf16 OK)
    tgt = target.reshape(n, 1, hw).astype(jnp.int32)
    conf = confidence.reshape(n, 1, hw)

    # Lane-dense pixel tile: multiple of 128 when possible; ragged tail masked in-kernel.
    if hw % 128 == 0:
        tp = min(tile_pix, hw)
    elif hw > tile_pix:
        tp = tile_pix
    else:
        tp = hw
    grid = (n, pl.cdiv(hw, tp))

    out = pl.pallas_call(
        functools.partial(_calibrated_ce2d_kernel, bins=bins, hw=hw),
        out_shape=jax.ShapeDtypeStruct((1, 1), jnp.float32),
        grid_spec=pltpu.PrefetchScalarGridSpec(
            num_scalar_prefetch=0,
            grid=grid,
            in_specs=[
                pl.BlockSpec((1, c, tp), lambda b, i: (b, 0, i)),
                pl.BlockSpec((1, 1, tp), lambda b, i: (b, 0, i)),
                pl.BlockSpec((1, 1, tp), lambda b, i: (b, 0, i)),
            ],
            out_specs=pl.BlockSpec((1, 1), lambda b, i: (0, 0)),
            scratch_shapes=[
                pltpu.VMEM((1, tp), jnp.float32),   # per-lane weighted-logp partials
                pltpu.VMEM((1, tp), jnp.float32),   # per-lane selected-pixel counts
            ],
        ),
        compiler_params=pltpu.CompilerParams(
            dimension_semantics=("arbitrary", "arbitrary"),
        ),
    )(pred, tgt, conf)
    return out[0, 0]


def _reference_loss(predict, target, confidence, accuracies, n_bin):
    """Pure-JAX port of CalibratedCE2d.forward for verification."""
    n, c, h, w = predict.shape
    logits = jnp.transpose(predict, (0, 2, 3, 1)).reshape(-1, c)
    logp = jax.nn.log_softmax(logits, axis=-1)
    picked = jnp.take_along_axis(
        logp, target.reshape(-1, 1).astype(jnp.int32), axis=1)[:, 0]
    conf = confidence.reshape(-1)
    boundaries = np.linspace(0.0, 1.0, 16).astype(np.float32)
    loss = jnp.zeros((), jnp.float32)
    size = jnp.zeros((), jnp.float32)
    for b in range(n_bin):
        lo = float(boundaries[b])
        up = 1.0 if b == n_bin - 1 else float(boundaries[b + 1])
        coeff = accuracies[b] * 10.0 - (1.0 - accuracies[b]) * 50.0
        if coeff > 0:
            in_bin = jnp.logical_and(conf > lo, conf <= up)
            size = size + jnp.sum(in_bin.astype(jnp.float32))
            loss = loss - coeff * jnp.sum(jnp.where(in_bin, picked, 0.0))
    return jnp.where(size > 0, loss / size, 0.0)


if __name__ == "__main__":
    key = jax.random.PRNGKey(0)
    k1, k2, k3 = jax.random.split(key, 3)

    N, C, H, W = 2, 4, 16, 16
    n_bin = 15
    predict = jax.random.normal(k1, (N, C, H, W), dtype=jnp.float32)
    target = jax.random.randint(k2, (N, H, W), 0, C, dtype=jnp.int32)
    confidence = jax.random.uniform(k3, (N * H * W,), dtype=jnp.float32)
    # per-bin accuracies (Python list, as in the PyTorch call): only bins with
    # accuracy > 5/6 get a positive coefficient and contribute.
    accuracies = [0.5 + 0.5 * b / (n_bin - 1) for b in range(n_bin)]

    loss = calibrated_ce2d(predict, target, confidence, accuracies, n_bin)
    loss = jax.block_until_ready(loss)

    ref = jax.block_until_ready(
        _reference_loss(predict, target, confidence, accuracies, n_bin))
    assert jnp.allclose(loss, ref, atol=1e-4, rtol=1e-4), (loss, ref)

    print("KERNEL_OK")
</pallas_src>

<mosaic_0001>
module attributes {stable_mosaic.version = 11 : i64} {
  func.func @_calibrated_ce2d_kernel(%arg0: i32, %arg1: i32, %arg2: memref<1x4x256xf32, #tpu.memory_space<vmem>>, %arg3: memref<1x1x256xi32, #tpu.memory_space<vmem>>, %arg4: memref<1x1x256xf32, #tpu.memory_space<vmem>>, %arg5: memref<1x1xf32, #tpu.memory_space<vmem>>, %arg6: memref<1x256xf32, #tpu.memory_space<vmem>>, %arg7: memref<1x256xf32, #tpu.memory_space<vmem>>) attributes {dimension_semantics = [#tpu.dimension_semantics<arbitrary>, #tpu.dimension_semantics<arbitrary>], iteration_bounds = array<i64: 2, 1>, scalar_prefetch = 0 : i64, scratch_operands = 2 : i64, tpu.core_type = #tpu.core_type<tc>, window_params = [{transform_indices = @transform_0, window_bounds = array<i64: 1, 4, 256>}, {transform_indices = @transform_1, window_bounds = array<i64: 1, 1, 256>}, {transform_indices = @transform_2, window_bounds = array<i64: 1, 1, 256>}, {pipeline_mode = #tpu.pipeline_mode<synchronous>, transform_indices = @transform_3, window_bounds = array<i64: 1, 1>}]} {
    %c0_i32 = arith.constant 0 : i32
    %0 = arith.cmpi eq, %arg0, %c0_i32 : i32
    %c0_i32_0 = arith.constant 0 : i32
    %1 = arith.cmpi eq, %arg1, %c0_i32_0 : i32
    %2 = arith.andi %0, %1 : i1
    %c1_i32 = arith.constant 1 : i32
    %3 = arith.cmpi eq, %arg0, %c1_i32 : i32
    %c0_i32_1 = arith.constant 0 : i32
    %4 = arith.cmpi eq, %arg1, %c0_i32_1 : i32
    %5 = arith.andi %3, %4 : i1
    %6 = arith.extui %2 : i1 to i32
    %c0_i32_2 = arith.constant 0 : i32
    %7 = arith.cmpi ne, %6, %c0_i32_2 : i32
    scf.if %7 {
      %cst_48 = arith.constant 0.000000e+00 : f32
      %112 = vector.broadcast %cst_48 : f32 to vector<1x256xf32>
      %c0_49 = arith.constant 0 : index
      %c0_50 = arith.constant 0 : index
      %113 = vector.load %arg6[%c0_49, %c0_50] : memref<1x256xf32, #tpu.memory_space<vmem>>, vector<1x256xf32>
      tpu.vector_store %arg6[%c0_49, %c0_50], %112 {strides = array<i32>} : memref<1x256xf32, #tpu.memory_space<vmem>>, vector<1x256xf32>,
      %cst_51 = arith.constant 0.000000e+00 : f32
      %114 = vector.broadcast %cst_51 : f32 to vector<1x256xf32>
      %c0_52 = arith.constant 0 : index
      %c0_53 = arith.constant 0 : index
      %115 = vector.load %arg7[%c0_52, %c0_53] : memref<1x256xf32, #tpu.memory_space<vmem>>, vector<1x256xf32>
      tpu.vector_store %arg7[%c0_52, %c0_53], %114 {strides = array<i32>} : memref<1x256xf32, #tpu.memory_space<vmem>>, vector<1x256xf32>,
    } else {
    }
    %c0 = arith.constant 0 : index
    %c0_3 = arith.constant 0 : index
    %c0_4 = arith.constant 0 : index
    %8 = vector.load %arg2[%c0, %c0_3, %c0_4] : memref<1x4x256xf32, #tpu.memory_space<vmem>>, vector<1x4x256xf32>
    %9 = vector.shape_cast %8 : vector<1x4x256xf32> to vector<4x256xf32>
    %c0_5 = arith.constant 0 : index
    %c0_6 = arith.constant 0 : index
    %c0_7 = arith.constant 0 : index
    %10 = vector.load %arg3[%c0_5, %c0_6, %c0_7] : memref<1x1x256xi32, #tpu.memory_space<vmem>>, vector<1x1x256xi32>
    %11 = vector.shape_cast %10 : vector<1x1x256xi32> to vector<1x256xi32>
    %c0_8 = arith.constant 0 : index
    %c0_9 = arith.constant 0 : index
    %c0_10 = arith.constant 0 : index
    %12 = vector.load %arg4[%c0_8, %c0_9, %c0_10] : memref<1x1x256xf32, #tpu.memory_space<vmem>>, vector<1x1x256xf32>
    %13 = vector.shape_cast %12 : vector<1x1x256xf32> to vector<1x256xf32>
    %cst = arith.constant dense<0xFF800000> : vector<256xf32>
    %14 = vector.multi_reduction <maximumf>, %9, %cst [0] : vector<4x256xf32> to vector<256xf32>
    %15 = vector.shape_cast %14 : vector<256xf32> to vector<1x256xf32>
    %16 = vector.broadcast %15 : vector<1x256xf32> to vector<4x256xf32>
    %17 = arith.subf %9, %16 : vector<4x256xf32>
    %18 = math.exp %17 : vector<4x256xf32>
    %cst_11 = arith.constant dense<0.000000e+00> : vector<256xf32>
    %19 = vector.multi_reduction <add>, %18, %cst_11 [0] : vector<4x256xf32> to vector<256xf32>
    %20 = vector.shape_cast %19 : vector<256xf32> to vector<1x256xf32>
    %21 = math.log %20 : vector<1x256xf32>
    %22 = arith.addf %15, %21 : vector<1x256xf32>
    %23 = tpu.iota {dimensions = array<i32: 0>} : vector<4x256xi32>
    %24 = vector.broadcast %11 : vector<1x256xi32> to vector<4x256xi32>
    %25 = arith.cmpi eq, %23, %24 : vector<4x256xi32>
    %cst_12 = arith.constant 0.000000e+00 : f32
    %26 = vector.broadcast %cst_12 : f32 to vector<4x256xf32>
    %27 = arith.select %25, %9, %26 : vector<4x256xi1>, vector<4x256xf32>
    %cst_13 = arith.constant dense<0.000000e+00> : vector<256xf32>
    %28 = vector.multi_reduction <add>, %27, %cst_13 [0] : vector<4x256xf32> to vector<256xf32>
    %29 = vector.shape_cast %28 : vector<256xf32> to vector<1x256xf32>
    %30 = arith.subf %29, %22 : vector<1x256xf32>
    %c256_i32 = arith.constant 256 : i32
    %31 = arith.muli %arg1, %c256_i32 : i32
    %32 = tpu.iota {dimensions = array<i32: 1>} : vector<1x256xi32>
    %33 = vector.broadcast %31 : i32 to vector<1x256xi32>
    %34 = arith.addi %33, %32 : vector<1x256xi32>
    %c256_i32_14 = arith.constant 256 : i32
    %35 = vector.broadcast %c256_i32_14 : i32 to vector<1x256xi32>
    %36 = arith.cmpi slt, %34, %35 : vector<1x256xi32>
    %cst_15 = arith.constant 0.000000e+00 : f32
    %37 = vector.broadcast %cst_15 : f32 to vector<1x256xf32>
    %cst_16 = arith.constant 0.000000e+00 : f32
    %38 = vector.broadcast %cst_16 : f32 to vector<1x256xf32>
    %cst_17 = arith.constant 0.666666686 : f32
    %39 = vector.broadcast %cst_17 : f32 to vector<1x256xf32>
    %40 = arith.cmpf ogt, %13, %39 : vector<1x256xf32>
    %cst_18 = arith.constant 0.733333349 : f32
    %41 = vector.broadcast %cst_18 : f32 to vector<1x256xf32>
    %42 = arith.cmpf ole, %13, %41 : vector<1x256xf32>
    %43 = arith.andi %40, %42 : vector<1x256xi1>
    %cst_19 = arith.constant 1.4285717 : f32
    %cst_20 = arith.constant 0.000000e+00 : f32
    %44 = vector.broadcast %cst_19 : f32 to vector<1x256xf32>
    %45 = vector.broadcast %cst_20 : f32 to vector<1x256xf32>
    %46 = arith.select %43, %44, %45 : vector<1x256xi1>, vector<1x256xf32>
    %47 = arith.addf %37, %46 : vector<1x256xf32>
    %48 = arith.extui %43 : vector<1x256xi1> to vector<1x256xi32>
    %49 = arith.sitofp %48 : vector<1x256xi32> to vector<1x256xf32>
    %50 = arith.addf %38, %49 : vector<1x256xf32>
    %cst_21 = arith.constant 0.733333349 : f32
    %51 = vector.broadcast %cst_21 : f32 to vector<1x256xf32>
    %52 = arith.cmpf ogt, %13, %51 : vector<1x256xf32>
    %cst_22 = arith.constant 8.000000e-01 : f32
    %53 = vector.broadcast %cst_22 : f32 to vector<1x256xf32>
    %54 = arith.cmpf ole, %13, %53 : vector<1x256xf32>
    %55 = arith.andi %52, %54 : vector<1x256xi1>
    %cst_23 = arith.constant 3.5714283 : f32
    %cst_24 = arith.constant 0.000000e+00 : f32
    %56 = vector.broadcast %cst_23 : f32 to vector<1x256xf32>
    %57 = vector.broadcast %cst_24 : f32 to vector<1x256xf32>
    %58 = arith.select %55, %56, %57 : vector<1x256xi1>, vector<1x256xf32>
    %59 = arith.addf %47, %58 : vector<1x256xf32>
    %60 = arith.extui %55 : vector<1x256xi1> to vector<1x256xi32>
    %61 = arith.sitofp %60 : vector<1x256xi32> to vector<1x256xf32>
    %62 = arith.addf %50, %61 : vector<1x256xf32>
    %cst_25 = arith.constant 8.000000e-01 : f32
    %63 = vector.broadcast %cst_25 : f32 to vector<1x256xf32>
    %64 = arith.cmpf ogt, %13, %63 : vector<1x256xf32>
    %cst_26 = arith.constant 0.866666674 : f32
    %65 = vector.broadcast %cst_26 : f32 to vector<1x256xf32>
    %66 = arith.cmpf ole, %13, %65 : vector<1x256xf32>
    %67 = arith.andi %64, %66 : vector<1x256xi1>
    %cst_27 = arith.constant 5.71428442 : f32
    %cst_28 = arith.constant 0.000000e+00 : f32
    %68 = vector.broadcast %cst_27 : f32 to vector<1x256xf32>
    %69 = vector.broadcast %cst_28 : f32 to vector<1x256xf32>
    %70 = arith.select %67, %68, %69 : vector<1x256xi1>, vector<1x256xf32>
    %71 = arith.addf %59, %70 : vector<1x256xf32>
    %72 = arith.extui %67 : vector<1x256xi1> to vector<1x256xi32>
    %73 = arith.sitofp %72 : vector<1x256xi32> to vector<1x256xf32>
    %74 = arith.addf %62, %73 : vector<1x256xf32>
    %cst_29 = arith.constant 0.866666674 : f32
    %75 = vector.broadcast %cst_29 : f32 to vector<1x256xf32>
    %76 = arith.cmpf ogt, %13, %75 : vector<1x256xf32>
    %cst_30 = arith.constant 0.933333337 : f32
    %77 = vector.broadcast %cst_30 : f32 to vector<1x256xf32>
    %78 = arith.cmpf ole, %13, %77 : vector<1x256xf32>
    %79 = arith.andi %76, %78 : vector<1x256xi1>
    %cst_31 = arith.constant 7.85714435 : f32
    %cst_32 = arith.constant 0.000000e+00 : f32
    %80 = vector.broadcast %cst_31 : f32 to vector<1x256xf32>
    %81 = vector.broadcast %cst_32 : f32 to vector<1x256xf32>
    %82 = arith.select %79, %80, %81 : vector<1x256xi1>, vector<1x256xf32>
    %83 = arith.addf %71, %82 : vector<1x256xf32>
    %84 = arith.extui %79 : vector<1x256xi1> to vector<1x256xi32>
    %85 = arith.sitofp %84 : vector<1x256xi32> to vector<1x256xf32>
    %86 = arith.addf %74, %85 : vector<1x256xf32>
    %cst_33 = arith.constant 0.933333337 : f32
    %87 = vector.broadcast %cst_33 : f32 to vector<1x256xf32>
    %88 = arith.cmpf ogt, %13, %87 : vector<1x256xf32>
    %cst_34 = arith.constant 1.000000e+00 : f32
    %89 = vector.broadcast %cst_34 : f32 to vector<1x256xf32>
    %90 = arith.cmpf ole, %13, %89 : vector<1x256xf32>
    %91 = arith.andi %88, %90 : vector<1x256xi1>
    %cst_35 = arith.constant 1.000000e+01 : f32
    %cst_36 = arith.constant 0.000000e+00 : f32
    %92 = vector.broadcast %cst_35 : f32 to vector<1x256xf32>
    %93 = vector.broadcast %cst_36 : f32 to vector<1x256xf32>
    %94 = arith.select %91, %92, %93 : vector<1x256xi1>, vector<1x256xf32>
    %95 = arith.addf %83, %94 : vector<1x256xf32>
    %96 = arith.extui %91 : vector<1x256xi1> to vector<1x256xi32>
    %97 = arith.sitofp %96 : vector<1x256xi32> to vector<1x256xf32>
    %98 = arith.addf %86, %97 : vector<1x256xf32>
    %99 = arith.mulf %30, %95 : vector<1x256xf32>
    %cst_37 = arith.constant 0.000000e+00 : f32
    %100 = vector.broadcast %cst_37 : f32 to vector<1x256xf32>
    %101 = arith.select %36, %99, %100 : vector<1x256xi1>, vector<1x256xf32>
    %cst_38 = arith.constant 0.000000e+00 : f32
    %102 = vector.broadcast %cst_38 : f32 to vector<1x256xf32>
    %103 = arith.select %36, %98, %102 : vector<1x256xi1>, vector<1x256xf32>
    %c0_39 = arith.constant 0 : index
    %c0_40 = arith.constant 0 : index
    %104 = vector.load %arg6[%c0_39, %c0_40] : memref<1x256xf32, #tpu.memory_space<vmem>>, vector<1x256xf32>
    %105 = arith.addf %104, %101 : vector<1x256xf32>
    %c0_41 = arith.constant 0 : index
    %c0_42 = arith.constant 0 : index
    %106 = vector.load %arg6[%c0_41, %c0_42] : memref<1x256xf32, #tpu.memory_space<vmem>>, vector<1x256xf32>
    tpu.vector_store %arg6[%c0_41, %c0_42], %105 {strides = array<i32>} : memref<1x256xf32, #tpu.memory_space<vmem>>, vector<1x256xf32>,
    %c0_43 = arith.constant 0 : index
    %c0_44 = arith.constant 0 : index
    %107 = vector.load %arg7[%c0_43, %c0_44] : memref<1x256xf32, #tpu.memory_space<vmem>>, vector<1x256xf32>
    %108 = arith.addf %107, %103 : vector<1x256xf32>
    %c0_45 = arith.constant 0 : index
    %c0_46 = arith.constant 0 : index
    %109 = vector.load %arg7[%c0_45, %c0_46] : memref<1x256xf32, #tpu.memory_space<vmem>>, vector<1x256xf32>
    tpu.vector_store %arg7[%c0_45, %c0_46], %108 {strides = array<i32>} : memref<1x256xf32, #tpu.memory_space<vmem>>, vector<1x256xf32>,
    %110 = arith.extui %5 : i1 to i32
    %c0_i32_47 = arith.constant 0 : i32
    %111 = arith.cmpi ne, %110, %c0_i32_47 : i32
    scf.if %111 {
      %c0_48 = arith.constant 0 : index
      %c0_49 = arith.constant 0 : index
      %112 = vector.load %arg6[%c0_48, %c0_49] : memref<1x256xf32, #tpu.memory_space<vmem>>, vector<1x256xf32>
      %113 = vector.shape_cast %112 : vector<1x256xf32> to vector<1x1x256xf32>
      %cst_50 = arith.constant dense<0.000000e+00> : vector<1xf32>
      %114 = vector.multi_reduction <add>, %113, %cst_50 [1, 2] : vector<1x1x256xf32> to vector<1xf32>
      %115 = vector.shape_cast %114 : vector<1xf32> to vector<1x1x1xf32>
      %116 = vector.extract %115[0, 0, 0] : f32 from vector<1x1x1xf32>
      %c0_51 = arith.constant 0 : index
      %c0_52 = arith.constant 0 : index
      %117 = vector.load %arg7[%c0_51, %c0_52] : memref<1x256xf32, #tpu.memory_space<vmem>>, vector<1x256xf32>
      %118 = vector.shape_cast %117 : vector<1x256xf32> to vector<1x1x256xf32>
      %cst_53 = arith.constant dense<0.000000e+00> : vector<1xf32>
      %119 = vector.multi_reduction <add>, %118, %cst_53 [1, 2] : vector<1x1x256xf32> to vector<1xf32>
      %120 = vector.shape_cast %119 : vector<1xf32> to vector<1x1x1xf32>
      %121 = vector.extract %120[0, 0, 0] : f32 from vector<1x1x1xf32>
      %cst_54 = arith.constant 0.000000e+00 : f32
      %122 = arith.cmpf ogt, %121, %cst_54 : f32
      %cst_55 = arith.constant 0.000000e+00 : f32
      %123 = arith.subf %cst_55, %116 : f32
      %124 = arith.divf %123, %121 : f32
      %cst_56 = arith.constant 0.000000e+00 : f32
      %125 = arith.select %122, %124, %cst_56 : f32
      %126 = vector.broadcast %125 : f32 to vector<1x1xf32>
      %c0_57 = arith.constant 0 : index
      %c0_58 = arith.constant 0 : index
      %127 = vector.load %arg5[%c0_57, %c0_58] : memref<1x1xf32, #tpu.memory_space<vmem>>, vector<1x1xf32>
      tpu.vector_store %arg5[%c0_57, %c0_58], %126 {strides = array<i32>} : memref<1x1xf32, #tpu.memory_space<vmem>>, vector<1x1xf32>,
    } else {
    }
    return
  }
  func.func @transform_0(%arg0: i32, %arg1: i32) -> (i32, i32, i32) {
    %c0_i32 = arith.constant 0 : i32
    %c0_i32_0 = arith.constant 0 : i32
    return %arg0, %c0_i32, %arg1 : i32, i32, i32
  }
  func.func @transform_1(%arg0: i32, %arg1: i32) -> (i32, i32, i32) {
    %c0_i32 = arith.constant 0 : i32
    %c0_i32_0 = arith.constant 0 : i32
    return %arg0, %c0_i32, %arg1 : i32, i32, i32
  }
  func.func @transform_2(%arg0: i32, %arg1: i32) -> (i32, i32, i32) {
    %c0_i32 = arith.constant 0 : i32
    %c0_i32_0 = arith.constant 0 : i32
    return %arg0, %c0_i32, %arg1 : i32, i32, i32
  }
  func.func @transform_3(%arg0: i32, %arg1: i32) -> (i32, i32) {
    %c0_i32 = arith.constant 0 : i32
    %c0_i32_0 = arith.constant 0 : i32
    %c0_i32_1 = arith.constant 0 : i32
    return %c0_i32, %c0_i32_0 : i32, i32
  }
}

</mosaic_0001>

<bundles_post_ra>
// kernel: tpu_custom_call.1
= control target key start
LH: loop header
LB: loop body
LE: loop exit
PB: predicated region body
PF: predicated region fallthrough
CT: control target
= control target key end

     0   :  { %8 = vsyncpa [#allocation5], 0  ;;  %s1249_s0 = inlined_call_operand.hbm [shape: f32[2,4,256], index: 0, kind: input, shape index: {}]   ;;  %s1250_s1 = inlined_call_operand.hbm [shape: s32[2,1,256], index: 1, kind: input, shape index: {}]   ;;  %s1251_s2 = inlined_call_operand.vmem [shape: f32[2,1,256], index: 2, kind: input, shape index: {}]   ;;  %s1252_s3 = inlined_call_operand.hbm [shape: f32[1,1], index: 3, kind: output, shape index: {}]  }
   0x1   :  { %10 = vsyncpa [#allocation5 + $0x1], 0 }
   0x2   :  { %11 = vsyncpa [#allocation8], 0 }
   0x3   :  { %13 = vsyncpa [#allocation8 + $0x1], 0 }
   0x4   :  { %14 = vsyncpa [#allocation6], 0  ;;  %s943_s12 = smov 0   ;;  %s945_s13 = smov 0  }
   0x5   :  { %s947_s14 = smov 0   ;;  %s949_s15 = smov 0  }
   0x6   :  { %s951_s16 = smov 0   ;;  %s953_s17 = smov 0  }
   0x7 LB: > { %s658_s18 = sadd.s32 4294967295, %s915_s17   ;;  %s32_s19 = sadd.s32 1, %s911_s16  ;;  %s915_s17 = sphi %s953_s17, %s20_s17   ;;  %s911_s16 = sphi %s951_s16, %s1279_s16   ;;  %s907_s15 = sphi %s949_s15, %s1278_s15   ;;  %s903_s14 = sphi %s947_s14, %s1277_s14   ;;  %s899_s13 = sphi %s945_s13, %s1276_s13   ;;  %s895_s12 = sphi %s943_s12, %s1275_s12  }
   0x8   : > { %p34_p0 = scmp.ge.s32.totalorder %s32_s19, 2  ;;  %s41_s20 = sadd.s32 1, %s903_s14 }
   0x9   : > { %p48_p1 = scmp.ne.s32.totalorder %s903_s14, %s899_s13  ;;  %p49_p2 = scmp.eq.s32.totalorder %s915_s17, 0 }
   0xa   : > { %s1281_s19 = smov (%p34_p0, %s32_s19), 0  ;;  %p54_p4 = scmp.ne.s32.totalorder %s899_s13, %s895_s12 }
   0xb   : > { %p979_p3 = por %p49_p2, %p48_p1  ;;  %s36_s22 = ssub.s32 %s911_s16, %s1281_s19 }
   0xc   : > { %p55_p5 = scmp.eq.s32.totalorder %s658_s18, 0  ;;  %p39_p6 = scmp.eq.s32.totalorder %s36_s22, 0 }
   0xd   : > { %p707_p8 = scmp.lt.s32.totalorder %s915_s17, 2  ;;  %s997_s25 = sand.u32 1, %s903_s14  }
   0xe   : > { %p988_p7 = por %p55_p5, %p54_p4  ;;  %s682_s26 = sshll.u32 %s911_s16, 7 }
   0xf   : > { %s994_s24 = scalar_select %p39_p6, %s903_s14, %s41_s20  }
  0x10   : > { %s1255_s23 = scalar_select %p988_p7, 1, 0 }
  0x11   : > { %s661_s27 = sshll.u32 %s997_s25, 3  ;;  %s1004_s30 = scalar_lea.hbm %s1249_s0, %s682_s26 }
  0x12   : > { %s159_s4 = scalar_lea.vmem [#allocation4], %s661_s27  ;;  %p1008_p9 = pnand %p707_p8, %p979_p3 }
  0x13   : > { %s169_s5 = sshll.u32 %s159_s4, 4  ;;  %s156_s7 = scalar_lea.sflag [#allocation5], %s997_s25  ;;  %s1012_s5 = int_to_ptr.vmem [resolvable:$true] %s169_s5 }
  0x14   : > { %s771_s8 = scalar_lea.hbm %s1004_s30, 128  ;;  %p773_p13 = pneg %p1008_p9 }
  0x15   : > { %p772_p12 = scmp.ne.s32.totalorder %s1004_s30, %s771_s8  ;;  %s776_s11 = scalar_lea.hbm %s1249_s0, 256 }
  0x16   : > { %p777_p2 = scmp.lt.u32.totalorder %s1004_s30, %s1249_s0  ;;  %p778_p3 = scmp.lt.u32.totalorder %s776_s11, %s771_s8 }
  0x17   : > { %p774_p0 = pnand %p773_p13, %p772_p12  ;;  %p780_p5 = scmp.lt.u32.totalorder %s771_s8, %s1004_s30 }
  0x18   : > { %p779_p4 = por %p778_p3, %p777_p2 }
  0x19   : > { %p775_p1 = pneg %p774_p0 }
  0x1a   : > { %p781_p6 = por %p780_p5, %p779_p4 }
  0x1c   : > { %p782_p8 = pnand %p781_p6, %p775_p1 }
  0x1e   : > { %785 = shalt.err (!%p782_p8)
}
  0x1f   : > { %s786_s21 = scalar_lea.vmem %s1012_s5, 128  ;;  %s917_s22 = smov [#allocation4]  }
  0x20   : > { %p787_p12 = scmp.ne.s32.totalorder %s1012_s5, %s786_s21  ;;  %s791_s26 = sshll.u32 %s917_s22, 4  ;;  %s792_s26 = int_to_ptr.vmem [resolvable:$false] %s791_s26 }
  0x21   : > { %s793_s27 = scalar_lea.vmem %s792_s26, 256  ;;  %p794_p11 = scmp.lt.s32.totalorder %s1012_s5, %s792_s26 }
  0x22   : > { %p789_p0 = pnand %p787_p12, %p773_p13  ;;  %p795_p2 = scmp.lt.s32.totalorder %s793_s27, %s786_s21 }
  0x24   : > { %p790_p10 = pneg %p789_p0  ;;  %p796_p3 = por %p795_p2, %p794_p11 }
  0x26   : > { %p797_p4 = pnand %p796_p3, %p790_p10 }
  0x28   : > { %800 = shalt.err (!%p797_p4)
}
  0x29   : > { %703 = dma.hbm_to_vmem [thread:$0]  (!%p1008_p9), %s1004_s30, 128, %s1012_s5, %s156_s7  }
  0x2a   : > { %p1257_p1 = scmp.lt.s32.totalorder %s915_s17, 3  ;;  %p1258_p5 = scmp.ge.s32.totalorder %s915_s17, 1 }
  0x2b   : > { %s664_s29 = sshll.u32 %s997_s25, 1  ;;  %s683_s4 = sshll.u32 %s911_s16, 5 }
  0x2c   : > { %p1046_p6 = pnand %p1258_p5, %p1257_p1  ;;  %s1055_s10 = scalar_lea.hbm %s1250_s1, %s683_s4 }
  0x2d   : > { %s180_s11 = scalar_lea.vmem [#allocation7], %s664_s29  ;;  %s177_s30 = scalar_lea.sflag [#allocation8], %s997_s25 }
  0x2e   : > { %s1259_s28 = scalar_select %p1046_p6, 1, 0 }
  0x2f   : > { %s190_s12 = sshll.u32 %s180_s11, 4  ;;  %s801_s5 = scalar_lea.hbm %s1055_s10, 32  ;;  %s191_s12 = int_to_ptr.vmem [resolvable:$true] %s190_s12 }
  0x30   : > { %p802_p10 = scmp.ne.s32.totalorder %s1055_s10, %s801_s5  ;;  %s806_s21 = scalar_lea.hbm %s1250_s1, 64 }
  0x31   : > { %p807_p12 = scmp.lt.u32.totalorder %s1055_s10, %s1250_s1  ;;  %p808_p0 = scmp.lt.u32.totalorder %s806_s21, %s801_s5 }
  0x32   : > { %p804_p11 = pnand %p802_p10, %p773_p13  ;;  %p810_p3 = scmp.lt.u32.totalorder %s801_s5, %s1055_s10 }
  0x33   : > { %p809_p2 = por %p808_p0, %p807_p12 }
  0x34   : > { %p805_p8 = pneg %p804_p11 }
  0x35   : > { %p811_p4 = por %p810_p3, %p809_p2 }
  0x37   : > { %p812_p1 = pnand %p811_p4, %p805_p8 }
  0x39   : > { %815 = shalt.err (!%p812_p1)
}
  0x3a   : > { %s816_s25 = scalar_lea.vmem %s191_s12, 32  ;;  %s918_s27 = smov [#allocation7]  }
  0x3b   : > { %p817_p5 = scmp.ne.s32.totalorder %s191_s12, %s816_s25  ;;  %s821_s29 = sshll.u32 %s918_s27, 4  ;;  %s822_s29 = int_to_ptr.vmem [resolvable:$false] %s821_s29 }
  0x3c   : > { %s823_s4 = scalar_lea.vmem %s822_s29, 64  ;;  %p824_p7 = scmp.lt.s32.totalorder %s191_s12, %s822_s29 }
  0x3d   : > { %p819_p10 = pnand %p817_p5, %p773_p13  ;;  %p825_p6 = scmp.lt.s32.totalorder %s823_s4, %s816_s25 }
  0x3f   : > { %p820_p11 = pneg %p819_p10  ;;  %p826_p0 = por %p825_p6, %p824_p7 }
  0x41   : > { %p827_p12 = pnand %p826_p0, %p820_p11 }
  0x43   : > { %830 = shalt.err (!%p827_p12)
}
  0x44   : > { %706 = dma.hbm_to_vmem [thread:$0]  (!%p1008_p9), %s1055_s10, 32, %s191_s12, %s177_s30  }
  0x45   : > { %p1260_p8 = scmp.ne.s32.totalorder %s1259_s28, 0 }
  0x46   : > { %s213_s8 = sand.u32 (!%p1260_p8), 1, %s899_s13   ;;  %p1261_p13 = scmp.ne.s32.totalorder (!%p1260_p8), %s1255_s23, 0 }
  0x47   : > { %211 = sbr.rel (%p1260_p8) target bundleno = 480 (0x1e0), region = 32  ;;  %s668_s9 = sshll.u32 (!%p1260_p8), %s213_s8, 3 }
  0x48   : > { %s214_s11 = scalar_lea.sflag (!%p1260_p8), [#allocation5], %s213_s8  ;;  %s217_s5 = scalar_lea.vmem (!%p1260_p8), [#allocation4], %s668_s9 }
  0x4e   : > { %882 = dma.done.wait (%p1261_p13), %s214_s11, 128  }
  0x4f   : > { %884 = vsyncadd (%p1261_p13), %s214_s11, 4294967168  ;;  %s669_s7 = sshll.u32 %s213_s8, 1  ;;  %s223_s20 = scalar_lea.sflag [#allocation8], %s213_s8 }
  0x50   : > { %s1084_s6 = scalar_lea.vmem [#allocation7], %s669_s7 }
  0x51   : > { %886 = dma.done.wait (%p1261_p13), %s223_s20, 32  }
  0x52   : > { %888 = vsyncadd (%p1261_p13), %s223_s20, 4294967264  ;;  %p260_p7 = scmp.lt.s32.totalorder %s907_s15, 1  ;;  %p268_p9 = scmp.eq.s32.totalorder %s907_s15, 0 }
  0x53   : > { %p272_p6 = scmp.eq.s32.totalorder %s907_s15, 1  ;;  %v277_v0 = vlaneseq (%p268_p9)  ;;  %v919_v1 = vmov (%p268_p9), 0.0  }
  0x54   : > { %s261_s28 = scalar_select %p260_p7, %s907_s15, 1 }
  0x55   : > { %276 = sbr.rel (!%p268_p9) target bundleno = 92 (0x5c), region = 44  ;;  %vm279_vm0 = vcmp.lt.s32.totalorder (%p268_p9), %v277_v0, 256 }
  0x56   : > { %s670_s10 = sshll.u32 %s261_s28, 1  ;;  %281 = vst.msk [vmem:[#allocation2] sm:$0x3] (%p268_p9), %vm279_vm0, %v919_v1  ;;  %282 = vst.msk [vmem:[#allocation3] sm:$0x3] (%p268_p9), %vm279_vm0, %v919_v1 }
  0x57   : > { %s266_s21 = scalar_lea.vmem %s1251_s2, %s670_s10 }
  0x5c PF: > { %v1097_v2 = vld [vmem:[%s217_s5] sm:$0xff]  ;;  %vm289_vm1 = vcmask 1043456   ;;  %v285_v9 = vld [vmem:[%s266_s21] sm:$0x3]  ;;  %v334_v16 = vlaneseq  ;;  %v920_v22 = vmov 0.0  }
  0x5d   : > { %v1101_v3 = vcombine.high %v1097_v2, %v1097_v2  ;;  %v290_v4 = vsel %vm289_vm1, %v1097_v2, -inf  ;;  %vm373_vm2 = vcmp.gt.f32.partialorder %v285_v9, 0.6666667  ;;  %vm374_vm3 = vcmp.le.f32.partialorder %v285_v9, 0.73333335 }
  0x5e   : > { %v291_v5 = vrot.slane %v290_v4, 4  ;;  %vm381_vm4 = vcmp.gt.f32.partialorder %v285_v9, 0.73333335  ;;  %vm382_vm5 = vcmp.le.f32.partialorder %v285_v9, 0.8  ;;  %vm1109_vm7 = vmand %vm373_vm2, %vm374_vm3  ;;  %vm406_vm12 = vcmp.le.f32.partialorder %v285_v9, 1.0 }
  0x5f   : > { %v297_v6 = vsel %vm289_vm1, %v1101_v3, -inf  ;;  %vm389_vm6 = vcmp.gt.f32.partialorder %v285_v9, 0.8  ;;  %vm390_vm8 = vcmp.le.f32.partialorder %v285_v9, 0.8666667  ;;  %vm1113_vm9 = vmand %vm381_vm4, %vm382_vm5  ;;  %v673_v23 = vsel %vm1109_vm7, 1.0, %v920_v22 }
  0x60   : > { %v292_v7 = vmax.f32 %v290_v4, %v291_v5  ;;  %v298_v8 = vrot.slane %v297_v6, 4  ;;  %vm397_vm10 = vcmp.gt.f32.partialorder %v285_v9, 0.8666667  ;;  %vm398_vm11 = vcmp.le.f32.partialorder %v285_v9, 0.93333334  ;;  %vm1125_vm14 = vmand %vm389_vm6, %vm390_vm8 }
  0x61   : > { %vm405_vm13 = vcmp.gt.f32.partialorder %v285_v9, 0.93333334  ;;  %v674_v24 = vsel %vm1113_vm9, 1.0, %v920_v22  ;;  %v921_v26 = vmov 1966171168   ;;  %v335_v30 = vshrl.u32 %v334_v16, 7  ;;  %vm1131_vm15 = vmand %vm397_vm10, %vm398_vm11 }
  0x62   : > { %v293_v10 = vrot.slane %v292_v7, 2  ;;  %v299_v11 = vmax.f32 %v297_v6, %v298_v8  ;;  %v446_v27 = vunpack.c.l.s4 %v921_v26  ;;  %v388_v28 = vadd.f32 %v674_v24, %v673_v23  ;;  %vm1138_vm0 = vmand %vm405_vm13, %vm406_vm12  ;;  %v284_v42 = vld [vmem:[%s1084_s6] sm:$0x3]  ;;  %v466_v52 = vld [vmem:[#allocation3] sm:$0x3] }
  0x63   : > { %v675_v32 = vsel %vm1125_vm14, 1.0, %v920_v22  ;;  %v676_v36 = vsel %vm1131_vm15, 1.0, %v920_v22  ;;  %v677_v37 = vsel %vm1138_vm0, 1.0, %v920_v22  ;;  %v1149_v41 = vsub.s32 0, %v335_v30 }
  0x64   : > { %v294_v12 = vmax.f32 %v292_v7, %v293_v10  ;;  %v300_v13 = vrot.slane %v299_v11, 2  ;;  %v396_v34 = vadd.f32 %v675_v32, %v388_v28  ;;  %v447_v38 = vunpack.c.0.s8 %v446_v27 }
  0x65   : > { %v1152_v43 = vsub.s32 1, %v335_v30  ;;  %v339_v48 = vrot.slane %v284_v42, %v1149_v41  ;;  %vm1162_vm4 = vcmp.lt.s32.totalorder %v334_v16, 256  ;;  %v384_v10 = vsel %vm1113_vm9, 3.5714283, %v920_v22 }
  0x66   : > { %v295_v14 = vrot.slane %v294_v12, 1  ;;  %v301_v15 = vmax.f32 %v299_v11, %v300_v13  ;;  %v404_v39 = vadd.f32 %v676_v36, %v396_v34  ;;  %v1154_v45 = vsub.s32 %v447_v38, %v335_v30 }
  0x67   : > { %v343_v50 = vrot.slane %v284_v42, %v1152_v43  ;;  %vm344_vm2 = vcmp.eq.s32.totalorder %v335_v30, %v339_v48  ;;  %v392_v23 = vsel %vm1125_vm14, 5.7142844, %v920_v22  ;;  %v400_v20 = vsel %vm1131_vm15, 7.8571444, %v920_v22 }
  0x68   : > { %v1107_v17 = vmax.f32 %v294_v12, %v295_v14  ;;  %v302_v18 = vrot.slane %v301_v15, 1  ;;  %v412_v44 = vadd.f32 %v677_v37, %v404_v39  ;;  %v346_v55 = vsel %vm344_vm2, %v1097_v2, 0.0 }
  0x69   : > { %vm345_vm3 = vcmp.eq.s32.totalorder %v335_v30, %v343_v50  ;;  %v348_v62 = vsel %vm289_vm1, %v346_v55, 0.0  ;;  %v408_v32 = vsel %vm1138_vm0, 10.0, %v920_v22  ;;  %vm546_vm5 = vcmask (%p272_p6), 0  }
  0x6a   : > { %v1117_v21 = vmax.f32 %v301_v15, %v302_v18  ;;  %v432_v46 = vrot.slane %v412_v44, %v1149_v41  ;;  %v436_v47 = vrot.slane %v412_v44, %v1152_v43  ;;  %v347_v60 = vsel %vm345_vm3, %v1101_v3, 0.0 }
  0x6b   : > { %v355_v4 = vsel %vm289_vm1, %v347_v60, 0.0  ;;  %v376_v3 = vsel %vm1109_vm7, 1.4285717, %v920_v22 }
  0x6c   : > { %v306_v29 = vcombine.low %v1107_v17, %v1117_v21  ;;  %v469_v49 = vcombine.low %v432_v46, %v436_v47  ;;  %v356_v7 = vrot.slane %v355_v4, 4  ;;  %v385_v15 = vadd.f32 %v384_v10, %v376_v3 }
  0x6e   : > { %v308_v35 = vsub.f32 %v1097_v2, %v306_v29  ;;  %v476_v51 = vrot.slane %v469_v49, %v1154_v45  ;;  %v349_v2 = vrot.slane %v348_v62, 4  ;;  %v357_v14 = vadd.f32 %v356_v7, %v355_v4 }
  0x6f   : > { %v393_v27 = vadd.f32 %v392_v23, %v385_v15 }
  0x70   : > { %v309_v40 = vmul.f32 1.442695, %v308_v35  ;;  %v483_v53 = vrot.slane %v476_v51, %v1154_v45  ;;  %v350_v11 = vadd.f32 %v349_v2, %v348_v62  ;;  %v358_v19 = vrot.slane %v357_v14, 2 }
  0x71   : > { %v401_v30 = vadd.f32 %v400_v20, %v393_v27 }
  0x72   : > { %763 = vpow2.f32 %v309_v40  ;;  %v485_v56 = vadd.f32 %v483_v53, %v466_v52  ;;  %v351_v24 = vrot.slane %v350_v11, 2  ;;  %v359_v29 = vadd.f32 %v358_v19, %v357_v14  ;;  %v441_v52 = vld [vmem:[#allocation2] sm:$0x3] }
  0x73   : > { %v409_v35 = vadd.f32 %v408_v32, %v401_v30 }
  0x74   : > { %486 = vst.msk [vmem:[#allocation3] sm:$0x3] %vm1162_vm4, %v485_v56  ;;  %v352_v28 = vadd.f32 %v351_v24, %v350_v11  ;;  %v360_v25 = vrot.slane %v359_v29, 1 }
  0x75   : > { %v417_v31 = vrot.slane %v409_v35, %v1149_v41  ;;  %v421_v48 = vrot.slane %v409_v35, %v1152_v43 }
  0x76   : > { %v353_v34 = vrot.slane %v352_v28, 1  ;;  %v361_v44 = vadd.f32 %v360_v25, %v359_v29 }
  0x78   : > { %v354_v38 = vadd.f32 %v353_v34, %v352_v28 }
  0x7c   : > { %v764_v57 = vpop.eup %763 }
  0x7d   : > { %v312_v58 = vcombine.high %v764_v57, %v764_v57  ;;  %v314_v59 = vsel %vm289_vm1, %v764_v57, 0.0 }
  0x7e   : > { %v315_v61 = vrot.slane %v314_v59, 4 }
  0x7f   : > { %v321_v63 = vsel %vm289_vm1, %v312_v58, 0.0  ;;  %vm501_vm1 = vcmask (%p272_p6), 1040384  }
  0x80   : > { %v316_v0 = vadd.f32 %v315_v61, %v314_v59  ;;  %v322_v1 = vrot.slane %v321_v63, 4 }
  0x82   : > { %v317_v5 = vrot.slane %v316_v0, 2  ;;  %v323_v6 = vadd.f32 %v322_v1, %v321_v63 }
  0x84   : > { %v318_v8 = vadd.f32 %v317_v5, %v316_v0  ;;  %v324_v9 = vrot.slane %v323_v6, 2 }
  0x86   : > { %v319_v12 = vrot.slane %v318_v8, 1  ;;  %v325_v13 = vadd.f32 %v324_v9, %v323_v6 }
  0x88   : > { %v320_v16 = vadd.f32 %v319_v12, %v318_v8  ;;  %v326_v18 = vrot.slane %v325_v13, 1 }
  0x8a   : > { %v327_v26 = vadd.f32 %v326_v18, %v325_v13  ;;  %765 = vlog2.f32 %v320_v16 }
  0x8c   : > { %767 = vlog2.f32 %v327_v26 }
  0x94   : > { %v766_v36 = vpop.eup %765 }
  0x95   : > { %v329_v37 = vmul.f32 0.6931472, %v766_v36 }
  0x96   : > { %v768_v39 = vpop.eup %767 }
  0x97   : > { %v331_v40 = vmul.f32 0.6931472, %v768_v39  ;;  %v332_v42 = vadd.f32 %v329_v37, %v1107_v17 }
  0x99   : > { %v333_v46 = vadd.f32 %v331_v40, %v1117_v21  ;;  %v362_v47 = vsub.f32 %v354_v38, %v332_v42  ;;  %v514_v21 = vld [vmem:[#allocation3] sm:$0x3] (%p272_p6) }
  0x9a   : > { %v519_v58 = vrot.slane (%p272_p6), %v514_v21, %v1149_v41  ;;  %v523_v59 = vrot.slane (%p272_p6), %v514_v21, %v1152_v43 }
  0x9b   : > { %v363_v33 = vsub.f32 %v361_v44, %v333_v46  ;;  %v424_v22 = vmul.f32 %v417_v31, %v362_v47 }
  0x9c   : > { %v526_v61 = vsel (%p272_p6), %vm501_vm1, %v519_v58, 0.0  ;;  %v527_v62 = vsel (%p272_p6), %vm501_vm1, %v523_v59, 0.0 }
  0x9d   : > { %v425_v49 = vmul.f32 %v421_v48, %v363_v33  ;;  %v528_v63 = vadd.f32 (%p272_p6), %v527_v62, %v526_v61 }
  0x9f   : > { %v444_v50 = vcombine.low %v424_v22, %v425_v49 }
  0xa1   : > { %v451_v51 = vrot.slane %v444_v50, %v1154_v45  ;;  %488 = sbr.rel (!%p272_p6) target bundleno = 455 (0x1c7), region = 48 }
  0xa3   : > { %v458_v53 = vrot.slane %v451_v51, %v1154_v45 }
  0xa5   : > { %v460_v55 = vadd.f32 %v458_v53, %v441_v52 }
  0xa7   : > { %465 = vst.msk [vmem:[#allocation2] sm:$0x3] %vm1162_vm4, %v460_v55 }
  0xae   : > { %v489_v17 = vld [vmem:[#allocation2] sm:$0x3] }
  0xaf   : > { %v494_v56 = vrot.slane %v489_v17, %v1149_v41  ;;  %v498_v57 = vrot.slane %v489_v17, %v1152_v43 }
  0xb1   : > { %v502_v60 = vsel %vm501_vm1, %v494_v56, 0.0  ;;  %v503_v45 = vsel %vm501_vm1, %v498_v57, 0.0 }
  0xb2   : > { %v504_v54 = vadd.f32 %v503_v45, %v502_v60 }
  0xb4   : > { %505 = vadd.xlane.f32.xlu0 %v504_v54 }
  0xb8   : > { %529 = vadd.xlane.f32.xlu0 %v528_v63 }
 0x141   : > { %v506_v0 = vpop.xlane.xlu0 %505 }
 0x142   : > { %v507_v1 = vrot.slane %v506_v0, 4 }
 0x144   : > { %v508_v4 = vadd.f32 %v507_v1, %v506_v0 }
 0x145   : > { %v530_v2 = vpop.xlane.xlu0 %529 }
 0x146   : > { %v509_v5 = vrot.slane %v508_v4, 2  ;;  %v531_v6 = vrot.slane %v530_v2, 4 }
 0x148   : > { %v532_v7 = vadd.f32 %v531_v6, %v530_v2  ;;  %v510_v8 = vadd.f32 %v509_v5, %v508_v4 }
 0x14a   : > { %v533_v9 = vrot.slane %v532_v7, 2  ;;  %v511_v41 = vrot.slane %v510_v8, 1 }
 0x14c   : > { %v534_v3 = vadd.f32 %v533_v9, %v532_v7  ;;  %v512_v43 = vadd.f32 %v511_v41, %v510_v8 }
 0x14e   : > { %686 = vpush %v512_v43  ;;  %v535_v10 = vrot.slane %v534_v3, 1 }
 0x150   : > { %v536_v11 = vadd.f32 %v535_v10, %v534_v3 }
 0x152   : > { %688 = vpush %v536_v11 }
 0x17f   : > { %s687_s15 = spop %686 }
 0x180   : > { %s539_s22 = ssub.f32 0.0, %s687_s15 }
 0x183   : > { %s689_s23 = spop %688 }
 0x184   : > { %v540_v12 = vstv %s689_s23  ;;  %p538_p2 = scmp.gt.f32.partialorder %s689_s23, 0.0 }
 0x185   : > { %769 = vrcp.f32 %v540_v12 }
 0x18f   : > { %v770_v13 = vpop.eup %769 }
 0x190   : > { %690 = vpush %v770_v13 }
 0x1c1   : > { %s691_s26 = spop %690 }
 0x1c2   : > { %s543_s25 = smul.f32 %s691_s26, %s539_s22 }
 0x1c4   : > { %s1283_s25 = smov (!%p538_p2, %s543_s25), 0.0 }
 0x1c5   : > { %v545_v14 = vstv %s1283_s25 }
 0x1c6   : > { %547 = vst.msk [vmem:[#allocation9] sm:$0x1] %vm546_vm5, %v545_v14 }
 0x1c7 PF: > { %p1205_p3 = scmp.eq.s32.totalorder %s658_s18, 1  ;;  %s922_s29 = smov [#allocation9]  }
 0x1c8   : > { %s555_s4 = sshll.u32 %s922_s29, 4  ;;  %s556_s4 = int_to_ptr.vmem [resolvable:$true] %s555_s4 }
 0x1c9   : > { %s831_s8 = scalar_lea.vmem %s556_s4, 16  ;;  %s837_s9 = scalar_lea.vmem %s556_s4, 32 }
 0x1ca   : > { %p832_p4 = scmp.ne.s32.totalorder %s556_s4, %s831_s8  ;;  %p838_p10 = scmp.lt.s32.totalorder %s556_s4, %s556_s4 }
 0x1cb   : > { %p839_p11 = scmp.lt.s32.totalorder %s837_s9, %s831_s8 }
 0x1cc   : > { %p833_p1 = pnand %p832_p4, %p1205_p3 }
 0x1cd   : > { %p840_p0 = por %p839_p11, %p838_p10 }
 0x1ce   : > { %p834_p5 = pneg %p833_p1 }
 0x1d0   : > { %p841_p12 = pnand %p840_p0, %p834_p5 }
 0x1d2   : > { %844 = shalt.err (!%p841_p12)
}
 0x1d3   : > { %s845_s5 = scalar_lea.hbm %s1252_s3, 16 }
 0x1d4   : > { %p846_p8 = scmp.ne.s32.totalorder %s1252_s3, %s845_s5  ;;  %p851_p9 = scmp.lt.u32.totalorder %s845_s5, %s1252_s3 }
 0x1d6   : > { %p847_p13 = pnand %p846_p8, %p1205_p3 }
 0x1d8   : > { %p848_p7 = pneg %p847_p13 }
 0x1da   : > { %p853_p6 = pnand %p851_p9, %p848_p7 }
 0x1dc   : > { %856 = shalt.err (!%p853_p6)
}
 0x1dd   : > { %697 = dma.vmem_to_hbm [thread:$0]  (%p1205_p3), %s556_s4, 16, %s1252_s3, [#allocation6]  }
 0x1de   : > { %890 = dma.done.wait (%p1205_p3), [#allocation6], 16  }
 0x1df   : > { %892 = vsyncadd (%p1205_p3), [#allocation6], 4294967280 }
 0x1e0 PF: > { %s20_s17 = sadd.s32 1, %s915_s17   ;;  %s1275_s12 = smov %s899_s13 }
 0x1e1   : > { %p17_p2 = scmp.ge.s32.totalorder %s20_s17, 4   ;;  %s1276_s13 = smov %s903_s14 }
 0x1e2   : > { %s1277_s14 = smov %s994_s24  ;;  %s1278_s15 = smov %s911_s16 }
 0x1e3   : > { %s1279_s16 = smov %s1281_s19  ;;  %19 = sbr.rel (!%p17_p2) target bundleno = 7 (0x7), region = 93 }
 0x1ea   :  { %568 = vsyncpa [#allocation5], 1 }
 0x1eb   :  { %570 = vsyncpa [#allocation5 + $0x1], 1 }
 0x1ec   :  { %571 = vsyncpa [#allocation8], 1 }
 0x1ed   :  { %573 = vsyncpa [#allocation8 + $0x1], 1 }
 0x1ee   :  { %574 = vsyncpa [#allocation6], 1 }
 0x1ef   :  { %576 = vsyncpa [#allocation6 + $0x1], 1 }

</bundles_post_ra>
